<compile_context>
chip_gen: v7x
topology: tpu7x:2x2x1
jax: 0.10.0
libtpu: 0.0.40
codegen_flags: <defaults>
</compile_context>

<pallas_src>
import functools
import math

import jax
import jax.numpy as jnp
from jax.experimental import pallas as pl
from jax.experimental.pallas import tpu as pltpu

GN_EPS = 1e-8   # GlobLN = nn.GroupNorm(1, nOut, eps=1e-08)


def _conv_norm_act_kernel(xp_ref, w_ref, b_ref, gamma_ref, beta_ref, alpha_ref,
                          out_ref, *, ksize):
    """One batch sample: Conv1d(k, pad=(k-1)//2, bias) -> GroupNorm(1) -> PReLU.

    xp_ref:    (nIn, T + ksize - 1)  zero-padded input slab (VMEM)
    w_ref:     (ksize, nOut, nIn)    conv weight, tap-major (VMEM)
    b_ref:     (nOut, 1)             conv bias (VMEM)
    gamma_ref: (nOut, 1)             GroupNorm weight (VMEM)
    beta_ref:  (nOut, 1)             GroupNorm bias (VMEM)
    alpha_ref: (1, 1)                PReLU slope (SMEM scalar)
    out_ref:   (nOut, T)
    """
    nOut, T = out_ref.shape

    # ---- Conv1d: k shifted matmuls on the padded slab (MXU) ----------------
    acc = jnp.dot(w_ref[0], xp_ref[:, 0:T], preferred_element_type=jnp.float32)
    for kk in range(1, ksize):                         # small static tap loop
        acc = acc + jnp.dot(w_ref[kk], xp_ref[:, kk:kk + T],
                            preferred_element_type=jnp.float32)
    acc = acc + b_ref[...]                             # conv bias

    # ---- GroupNorm(num_groups=1): stats over the whole (nOut, T) sample ----
    mu = jnp.mean(acc)
    var = jnp.mean((acc - mu) ** 2)
    y = (acc - mu) * jax.lax.rsqrt(var + GN_EPS)
    y = y * gamma_ref[...] + beta_ref[...]

    # ---- PReLU (single shared learnable slope) ------------------------------
    a = alpha_ref[0, 0]
    out_ref[...] = jnp.where(y >= 0.0, y, a * y).astype(out_ref.dtype)


def conv_norm_act_forward(x, params, *, ksize, stride=1, groups=1):
    """Pallas forward for ConvNormAct. x: (B, nIn, T) float32."""
    # TODO(synk): only the stride=1, groups=1 Conv1d path is implemented; a
    # strided / grouped (depthwise) variant needs strided lane slices or a
    # per-group block-diagonal matmul, and very long T needs a T-tiled grid
    # with a (ksize-1)-halo plus a two-pass (sum / sum-of-squares) GroupNorm.
    assert stride == 1 and groups == 1, "stride/groups > 1 not implemented"
    assert ksize % 2 == 1, "odd kernel size expected (padding = (k-1)//2)"

    B, nIn, T = x.shape
    nOut = params["w"].shape[0]
    pad = (ksize - 1) // 2
    Tp = T + 2 * pad

    xp = jnp.pad(x.astype(jnp.float32), ((0, 0), (0, 0), (pad, pad)))
    # PyTorch conv weight is (nOut, nIn, k) -> tap-major (k, nOut, nIn) so each
    # tap is a plain 2-D MXU matmul against the shifted input slab.
    w_taps = jnp.transpose(params["w"].astype(jnp.float32), (2, 0, 1))
    col = lambda v: v.reshape(-1, 1).astype(jnp.float32)
    alpha = params["alpha"].reshape(1, 1).astype(jnp.float32)

    kernel = functools.partial(_conv_norm_act_kernel, ksize=ksize)
    return pl.pallas_call(
        kernel,
        out_shape=jax.ShapeDtypeStruct((B, nOut, T), x.dtype),
        grid=(B,),
        in_specs=[
            # padded input: one (nIn, Tp) slab per grid step (batch squeezed)
            pl.BlockSpec((None, nIn, Tp), lambda b: (b, 0, 0)),
            # weights / bias / affine params: resident, same block every step
            pl.BlockSpec((ksize, nOut, nIn), lambda b: (0, 0, 0)),
            pl.BlockSpec((nOut, 1), lambda b: (0, 0)),
            pl.BlockSpec((nOut, 1), lambda b: (0, 0)),
            pl.BlockSpec((nOut, 1), lambda b: (0, 0)),
            # PReLU slope as an SMEM scalar
            pl.BlockSpec((1, 1), lambda b: (0, 0),
                         memory_space=pltpu.MemorySpace.SMEM),
        ],
        out_specs=pl.BlockSpec((None, nOut, T), lambda b: (b, 0, 0)),
        compiler_params=pltpu.CompilerParams(
            dimension_semantics=("parallel",)),
    )(xp, w_taps, col(params["b"]), col(params["gamma"]), col(params["beta"]),
      alpha)


def reference_forward(x, params, *, ksize, stride=1, groups=1):
    """Pure-JAX reference mirroring the PyTorch ConvNormAct (eval mode)."""
    pad = (ksize - 1) // 2
    y = jax.lax.conv_general_dilated(
        x.astype(jnp.float32), params["w"].astype(jnp.float32),
        window_strides=(stride,), padding=[(pad, pad)],
        dimension_numbers=("NCH", "OIH", "NCH"),
        feature_group_count=groups,
        precision=jax.lax.Precision.HIGHEST)
    y = y + params["b"][None, :, None]
    mu = y.mean(axis=(1, 2), keepdims=True)                 # GroupNorm(1, nOut)
    var = ((y - mu) ** 2).mean(axis=(1, 2), keepdims=True)
    y = (y - mu) / jnp.sqrt(var + GN_EPS)
    y = y * params["gamma"][None, :, None] + params["beta"][None, :, None]
    a = params["alpha"][0]                                   # PReLU
    return jnp.where(y >= 0.0, y, a * y)


def init_params(key, nIn, nOut, ksize):
    ks = jax.random.split(key, 4)
    bound = 1.0 / math.sqrt(nIn * ksize)                     # PyTorch conv init
    return {
        "w": jax.random.uniform(ks[0], (nOut, nIn, ksize), jnp.float32,
                                -bound, bound),
        "b": jax.random.uniform(ks[1], (nOut,), jnp.float32, -bound, bound),
        "gamma": 1.0 + 0.1 * jax.random.normal(ks[2], (nOut,), jnp.float32),
        "beta": 0.1 * jax.random.normal(ks[3], (nOut,), jnp.float32),
        "alpha": jnp.array([0.25], jnp.float32),             # nn.PReLU() default
    }


if __name__ == "__main__":
    # small shapes: batch=2, nIn=16, nOut=32, kSize=5, T=16 (stride=1, groups=1)
    B, nIn, nOut, ksize, T = 2, 16, 32, 5, 16
    key = jax.random.PRNGKey(0)
    kx, kp = jax.random.split(key)
    x = jax.random.normal(kx, (B, nIn, T), dtype=jnp.float32)
    params = init_params(kp, nIn, nOut, ksize)

    out = conv_norm_act_forward(x, params, ksize=ksize)
    out = jax.block_until_ready(out)
    assert out.shape == (B, nOut, T)

    ref = reference_forward(x, params, ksize=ksize)
    err = float(jnp.max(jnp.abs(out - ref)))
    if err > 2e-3:
        raise AssertionError(
            f"Pallas kernel mismatch vs JAX reference: max abs err = {err}")
    print("KERNEL_OK")
</pallas_src>

<mosaic_0001>
module attributes {stable_mosaic.version = 11 : i64} {
  func.func @_conv_norm_act_kernel(%arg0: i32, %arg1: memref<1x16x20xf32, #tpu.memory_space<vmem>>, %arg2: memref<5x32x16xf32, #tpu.memory_space<vmem>>, %arg3: memref<32x1xf32, #tpu.memory_space<vmem>>, %arg4: memref<32x1xf32, #tpu.memory_space<vmem>>, %arg5: memref<32x1xf32, #tpu.memory_space<vmem>>, %arg6: memref<1x1xf32, #tpu.memory_space<smem>>, %arg7: memref<1x32x16xf32, #tpu.memory_space<vmem>>) attributes {dimension_semantics = [#tpu.dimension_semantics<parallel>], iteration_bounds = array<i64: 2>, scalar_prefetch = 0 : i64, scratch_operands = 0 : i64, tpu.core_type = #tpu.core_type<tc>, window_params = [{transform_indices = @transform_0, window_bounds = array<i64: 1, 16, 20>}, {pipeline_mode = #tpu.pipeline_mode<synchronous>, transform_indices = @transform_1, window_bounds = array<i64: 5, 32, 16>}, {pipeline_mode = #tpu.pipeline_mode<synchronous>, transform_indices = @transform_2, window_bounds = array<i64: 32, 1>}, {pipeline_mode = #tpu.pipeline_mode<synchronous>, transform_indices = @transform_3, window_bounds = array<i64: 32, 1>}, {pipeline_mode = #tpu.pipeline_mode<synchronous>, transform_indices = @transform_4, window_bounds = array<i64: 32, 1>}, {transform_indices = @transform_5, window_bounds = array<i64: 1, 1>}, {transform_indices = @transform_6, window_bounds = array<i64: 1, 32, 16>}]} {
    %c0 = arith.constant 0 : index
    %c0_0 = arith.constant 0 : index
    %c0_1 = arith.constant 0 : index
    %0 = vector.load %arg2[%c0, %c0_0, %c0_1] : memref<5x32x16xf32, #tpu.memory_space<vmem>>, vector<1x32x16xf32>
    %1 = vector.shape_cast %0 : vector<1x32x16xf32> to vector<32x16xf32>
    %c0_2 = arith.constant 0 : index
    %c0_3 = arith.constant 0 : index
    %c0_4 = arith.constant 0 : index
    %2 = vector.load %arg1[%c0_2, %c0_3, %c0_4] : memref<1x16x20xf32, #tpu.memory_space<vmem>>, vector<1x16x16xf32>
    %3 = vector.shape_cast %2 : vector<1x16x16xf32> to vector<16x16xf32>
    %cst = arith.constant dense<0.000000e+00> : vector<32x16xf32>
    %4 = tpu.matmul %1, %3, %cst {dimension_numbers = #tpu.dot_dimension_numbers<[1], [0], [0], [1], [0, 0, 1, 1], [], []>} : vector<32x16xf32>, vector<16x16xf32>, vector<32x16xf32> -> vector<32x16xf32>
    %c1 = arith.constant 1 : index
    %c0_5 = arith.constant 0 : index
    %c0_6 = arith.constant 0 : index
    %5 = vector.load %arg2[%c1, %c0_5, %c0_6] : memref<5x32x16xf32, #tpu.memory_space<vmem>>, vector<1x32x16xf32>
    %6 = vector.shape_cast %5 : vector<1x32x16xf32> to vector<32x16xf32>
    %c0_7 = arith.constant 0 : index
    %c0_8 = arith.constant 0 : index
    %c1_9 = arith.constant 1 : index
    %7 = vector.load %arg1[%c0_7, %c0_8, %c1_9] : memref<1x16x20xf32, #tpu.memory_space<vmem>>, vector<1x16x16xf32>
    %8 = vector.shape_cast %7 : vector<1x16x16xf32> to vector<16x16xf32>
    %cst_10 = arith.constant dense<0.000000e+00> : vector<32x16xf32>
    %9 = tpu.matmul %6, %8, %cst_10 {dimension_numbers = #tpu.dot_dimension_numbers<[1], [0], [0], [1], [0, 0, 1, 1], [], []>} : vector<32x16xf32>, vector<16x16xf32>, vector<32x16xf32> -> vector<32x16xf32>
    %10 = arith.addf %4, %9 : vector<32x16xf32>
    %c2 = arith.constant 2 : index
    %c0_11 = arith.constant 0 : index
    %c0_12 = arith.constant 0 : index
    %11 = vector.load %arg2[%c2, %c0_11, %c0_12] : memref<5x32x16xf32, #tpu.memory_space<vmem>>, vector<1x32x16xf32>
    %12 = vector.shape_cast %11 : vector<1x32x16xf32> to vector<32x16xf32>
    %c0_13 = arith.constant 0 : index
    %c0_14 = arith.constant 0 : index
    %c2_15 = arith.constant 2 : index
    %13 = vector.load %arg1[%c0_13, %c0_14, %c2_15] : memref<1x16x20xf32, #tpu.memory_space<vmem>>, vector<1x16x16xf32>
    %14 = vector.shape_cast %13 : vector<1x16x16xf32> to vector<16x16xf32>
    %cst_16 = arith.constant dense<0.000000e+00> : vector<32x16xf32>
    %15 = tpu.matmul %12, %14, %cst_16 {dimension_numbers = #tpu.dot_dimension_numbers<[1], [0], [0], [1], [0, 0, 1, 1], [], []>} : vector<32x16xf32>, vector<16x16xf32>, vector<32x16xf32> -> vector<32x16xf32>
    %16 = arith.addf %10, %15 : vector<32x16xf32>
    %c3 = arith.constant 3 : index
    %c0_17 = arith.constant 0 : index
    %c0_18 = arith.constant 0 : index
    %17 = vector.load %arg2[%c3, %c0_17, %c0_18] : memref<5x32x16xf32, #tpu.memory_space<vmem>>, vector<1x32x16xf32>
    %18 = vector.shape_cast %17 : vector<1x32x16xf32> to vector<32x16xf32>
    %c0_19 = arith.constant 0 : index
    %c0_20 = arith.constant 0 : index
    %c3_21 = arith.constant 3 : index
    %19 = vector.load %arg1[%c0_19, %c0_20, %c3_21] : memref<1x16x20xf32, #tpu.memory_space<vmem>>, vector<1x16x16xf32>
    %20 = vector.shape_cast %19 : vector<1x16x16xf32> to vector<16x16xf32>
    %cst_22 = arith.constant dense<0.000000e+00> : vector<32x16xf32>
    %21 = tpu.matmul %18, %20, %cst_22 {dimension_numbers = #tpu.dot_dimension_numbers<[1], [0], [0], [1], [0, 0, 1, 1], [], []>} : vector<32x16xf32>, vector<16x16xf32>, vector<32x16xf32> -> vector<32x16xf32>
    %22 = arith.addf %16, %21 : vector<32x16xf32>
    %c4 = arith.constant 4 : index
    %c0_23 = arith.constant 0 : index
    %c0_24 = arith.constant 0 : index
    %23 = vector.load %arg2[%c4, %c0_23, %c0_24] : memref<5x32x16xf32, #tpu.memory_space<vmem>>, vector<1x32x16xf32>
    %24 = vector.shape_cast %23 : vector<1x32x16xf32> to vector<32x16xf32>
    %c0_25 = arith.constant 0 : index
    %c0_26 = arith.constant 0 : index
    %c4_27 = arith.constant 4 : index
    %25 = vector.load %arg1[%c0_25, %c0_26, %c4_27] : memref<1x16x20xf32, #tpu.memory_space<vmem>>, vector<1x16x16xf32>
    %26 = vector.shape_cast %25 : vector<1x16x16xf32> to vector<16x16xf32>
    %cst_28 = arith.constant dense<0.000000e+00> : vector<32x16xf32>
    %27 = tpu.matmul %24, %26, %cst_28 {dimension_numbers = #tpu.dot_dimension_numbers<[1], [0], [0], [1], [0, 0, 1, 1], [], []>} : vector<32x16xf32>, vector<16x16xf32>, vector<32x16xf32> -> vector<32x16xf32>
    %28 = arith.addf %22, %27 : vector<32x16xf32>
    %c0_29 = arith.constant 0 : index
    %c0_30 = arith.constant 0 : index
    %29 = vector.load %arg3[%c0_29, %c0_30] : memref<32x1xf32, #tpu.memory_space<vmem>>, vector<32x1xf32>
    %30 = vector.broadcast %29 : vector<32x1xf32> to vector<32x16xf32>
    %31 = arith.addf %28, %30 : vector<32x16xf32>
    %32 = vector.shape_cast %31 : vector<32x16xf32> to vector<1x32x16xf32>
    %cst_31 = arith.constant dense<0.000000e+00> : vector<1xf32>
    %33 = vector.multi_reduction <add>, %32, %cst_31 [1, 2] : vector<1x32x16xf32> to vector<1xf32>
    %34 = vector.shape_cast %33 : vector<1xf32> to vector<1x1x1xf32>
    %35 = vector.extract %34[0, 0, 0] : f32 from vector<1x1x1xf32>
    %cst_32 = arith.constant 5.120000e+02 : f32
    %36 = arith.divf %35, %cst_32 : f32
    %37 = vector.broadcast %36 : f32 to vector<32x16xf32>
    %38 = arith.subf %31, %37 : vector<32x16xf32>
    %39 = arith.mulf %38, %38 : vector<32x16xf32>
    %40 = vector.shape_cast %39 : vector<32x16xf32> to vector<1x32x16xf32>
    %cst_33 = arith.constant dense<0.000000e+00> : vector<1xf32>
    %41 = vector.multi_reduction <add>, %40, %cst_33 [1, 2] : vector<1x32x16xf32> to vector<1xf32>
    %42 = vector.shape_cast %41 : vector<1xf32> to vector<1x1x1xf32>
    %43 = vector.extract %42[0, 0, 0] : f32 from vector<1x1x1xf32>
    %cst_34 = arith.constant 5.120000e+02 : f32
    %44 = arith.divf %43, %cst_34 : f32
    %45 = vector.broadcast %36 : f32 to vector<32x16xf32>
    %46 = arith.subf %31, %45 : vector<32x16xf32>
    %cst_35 = arith.constant 9.99999993E-9 : f32
    %47 = arith.addf %44, %cst_35 : f32
    %48 = math.rsqrt %47 : f32
    %49 = vector.broadcast %48 : f32 to vector<32x16xf32>
    %50 = arith.mulf %46, %49 : vector<32x16xf32>
    %c0_36 = arith.constant 0 : index
    %c0_37 = arith.constant 0 : index
    %51 = vector.load %arg4[%c0_36, %c0_37] : memref<32x1xf32, #tpu.memory_space<vmem>>, vector<32x1xf32>
    %52 = vector.broadcast %51 : vector<32x1xf32> to vector<32x16xf32>
    %53 = arith.mulf %50, %52 : vector<32x16xf32>
    %c0_38 = arith.constant 0 : index
    %c0_39 = arith.constant 0 : index
    %54 = vector.load %arg5[%c0_38, %c0_39] : memref<32x1xf32, #tpu.memory_space<vmem>>, vector<32x1xf32>
    %55 = vector.broadcast %54 : vector<32x1xf32> to vector<32x16xf32>
    %56 = arith.addf %53, %55 : vector<32x16xf32>
    %c0_40 = arith.constant 0 : index
    %c0_41 = arith.constant 0 : index
    %57 = memref.load %arg6[%c0_40, %c0_41] : memref<1x1xf32, #tpu.memory_space<smem>>
    %cst_42 = arith.constant 0.000000e+00 : f32
    %58 = vector.broadcast %cst_42 : f32 to vector<32x16xf32>
    %59 = arith.cmpf oge, %56, %58 : vector<32x16xf32>
    %60 = vector.broadcast %57 : f32 to vector<32x16xf32>
    %61 = arith.mulf %60, %56 : vector<32x16xf32>
    %62 = arith.select %59, %56, %61 : vector<32x16xi1>, vector<32x16xf32>
    %c0_43 = arith.constant 0 : index
    %c0_44 = arith.constant 0 : index
    %c0_45 = arith.constant 0 : index
    %63 = vector.load %arg7[%c0_43, %c0_44, %c0_45] : memref<1x32x16xf32, #tpu.memory_space<vmem>>, vector<1x32x16xf32>
    %64 = vector.shape_cast %63 : vector<1x32x16xf32> to vector<32x16xf32>
    %65 = vector.shape_cast %62 : vector<32x16xf32> to vector<1x32x16xf32>
    tpu.vector_store %arg7[%c0_43, %c0_44, %c0_45], %65 {strides = array<i32>} : memref<1x32x16xf32, #tpu.memory_space<vmem>>, vector<1x32x16xf32>,
    return
  }
  func.func @transform_0(%arg0: i32) -> (i32, i32, i32) {
    %c0_i32 = arith.constant 0 : i32
    %c0_i32_0 = arith.constant 0 : i32
    %c0_i32_1 = arith.constant 0 : i32
    return %arg0, %c0_i32, %c0_i32_0 : i32, i32, i32
  }
  func.func @transform_1(%arg0: i32) -> (i32, i32, i32) {
    %c0_i32 = arith.constant 0 : i32
    %c0_i32_0 = arith.constant 0 : i32
    %c0_i32_1 = arith.constant 0 : i32
    %c0_i32_2 = arith.constant 0 : i32
    return %c0_i32, %c0_i32_0, %c0_i32_1 : i32, i32, i32
  }
  func.func @transform_2(%arg0: i32) -> (i32, i32) {
    %c0_i32 = arith.constant 0 : i32
    %c0_i32_0 = arith.constant 0 : i32
    %c0_i32_1 = arith.constant 0 : i32
    return %c0_i32, %c0_i32_0 : i32, i32
  }
  func.func @transform_3(%arg0: i32) -> (i32, i32) {
    %c0_i32 = arith.constant 0 : i32
    %c0_i32_0 = arith.constant 0 : i32
    %c0_i32_1 = arith.constant 0 : i32
    return %c0_i32, %c0_i32_0 : i32, i32
  }
  func.func @transform_4(%arg0: i32) -> (i32, i32) {
    %c0_i32 = arith.constant 0 : i32
    %c0_i32_0 = arith.constant 0 : i32
    %c0_i32_1 = arith.constant 0 : i32
    return %c0_i32, %c0_i32_0 : i32, i32
  }
  func.func @transform_5(%arg0: i32) -> (i32, i32) {
    %c0_i32 = arith.constant 0 : i32
    %c0_i32_0 = arith.constant 0 : i32
    %c0_i32_1 = arith.constant 0 : i32
    return %c0_i32, %c0_i32_0 : i32, i32
  }
  func.func @transform_6(%arg0: i32) -> (i32, i32, i32) {
    %c0_i32 = arith.constant 0 : i32
    %c0_i32_0 = arith.constant 0 : i32
    %c0_i32_1 = arith.constant 0 : i32
    return %arg0, %c0_i32, %c0_i32_0 : i32, i32, i32
  }
}

</mosaic_0001>

<bundles_post_ra>
// kernel: tpu_custom_call.1
= control target key start
LH: loop header
LB: loop body
LE: loop exit
PB: predicated region body
PF: predicated region fallthrough
CT: control target
= control target key end

     0   :  { %s1277_s23 = smov 0   ;;  %s1426_s0 = inlined_call_operand.vmem [shape: f32[2,16,20], index: 0, kind: input, shape index: {}]   ;;  %s1427_s1 = inlined_call_operand.vmem [shape: f32[5,32,16], index: 1, kind: input, shape index: {}]   ;;  %s1428_s2 = inlined_call_operand.vmem [shape: f32[32,1], index: 2, kind: input, shape index: {}]   ;;  %s1429_s3 = inlined_call_operand.vmem [shape: f32[32,1], index: 3, kind: input, shape index: {}]   ;;  %s1430_s4 = inlined_call_operand.vmem [shape: f32[32,1], index: 4, kind: input, shape index: {}]   ;;  %s1431_s5 = inlined_call_operand.<no memory space> [shape: f32[1,1], index: 5, kind: input, shape index: {}]   ;;  %s1432_s6 = inlined_call_operand.vmem [shape: f32[2,32,16], index: 6, kind: output, shape index: {}]  }
   0x1   :  { %11 = sst [smem:[#allocation2]] %s1431_s5 }
   0x2 LB: > { %s1016_s24 = sadd.s32 4294967295, %s1232_s23   ;;  %p1020_p0 = scmp.ge.s32.totalorder %s1232_s23, 1  ;;  %s1232_s23 = sphi %s1277_s23, %s17_s23  }
   0x3   : > { %p213_p1 = scmp.lt.s32.totalorder %s1232_s23, 3 }
   0x5   : > { %p214_p2 = pnand %p1020_p0, %p213_p1 }
   0x6   : > { %p243_p3 = scmp.lt.s32.totalorder (!%p214_p2), %s1016_s24, 1  ;;  %v1025_v0 = vld [vmem:[%s1427_s1 + $0x20] sm:$0xff] (!%p214_p2)  ;;  %vm272_vm0 = vcmask (!%p214_p2), 130048   ;;  %s1234_s8 = smov (!%p214_p2), 127   ;;  %v804_v6 = vld [vmem:[%s1428_s2 + $0x8] sm:$0xff] (!%p214_p2)  ;;  %v1238_v8 = vmov (!%p214_p2), 0  }
   0x7   : > { %217 = sbr.rel (%p214_p2) target bundleno = 890 (0x37a), region = 44  ;;  %1099 = vmatprep.mubr.msk.f32.mxu1 (!%p214_p2), %vm272_vm0, %v1025_v0  ;;  %v1037_v4 = vld [vmem:[%s1427_s1 + $0x40] sm:$0xff] (!%p214_p2)  ;;  %s1235_s9 = smov (!%p214_p2), 125   ;;  %1223 = vset.pattern.permute.xlu1 (!%p214_p2), %v1238_v8  ;;  %v805_v9 = vld [vmem:[%s1428_s2 + $0x10] sm:$0xff] (!%p214_p2)  ;;  %v806_v10 = vld [vmem:[%s1428_s2 + $0x18] sm:$0xff] (!%p214_p2) }
   0x8   : > { %1119 = vmatprep.mubr.msk.f32.mxu0 (!%p214_p2), %vm272_vm0, %v1037_v4  ;;  %s1236_s10 = smov (!%p214_p2), 126   ;;  %s1237_s11 = smov (!%p214_p2), 124   ;;  %v803_v7 = vld [vmem:[%s1428_s2] sm:$0xff] (!%p214_p2)  ;;  %1222 = vset.pattern.permute.xlu0 (!%p214_p2), %v1238_v8  ;;  %v1026_v22 = vld [vmem:[%s1427_s1 + $0x28] sm:$0xff] (!%p214_p2)  ;;  %v1027_v27 = vld [vmem:[%s1427_s1 + $0x30] sm:$0xff] (!%p214_p2) }
   0x9   : > { %v1028_v28 = vld [vmem:[%s1427_s1 + $0x38] sm:$0xff] (!%p214_p2)  ;;  %v1038_v29 = vld [vmem:[%s1427_s1 + $0x48] sm:$0xff] (!%p214_p2)  ;;  %v253_v31 = vld [vmem:[%s1427_s1] sm:$0xff] (!%p214_p2) }
   0xa   : > { %v1045_v32 = vld [vmem:[%s1427_s1 + $0x60] sm:$0xff] (!%p214_p2)  ;;  %v254_v33 = vld [vmem:[%s1427_s1 + $0x8] sm:$0xff] (!%p214_p2)  ;;  %v255_v34 = vld [vmem:[%s1427_s1 + $0x10] sm:$0xff] (!%p214_p2) }
   0xb   : > { %v256_v35 = vld [vmem:[%s1427_s1 + $0x18] sm:$0xff] (!%p214_p2)  ;;  %v1046_v36 = vld [vmem:[%s1427_s1 + $0x68] sm:$0xff] (!%p214_p2)  ;;  %v1047_v37 = vld [vmem:[%s1427_s1 + $0x70] sm:$0xff] (!%p214_p2) }
   0xc   : > { %v1039_v38 = vld [vmem:[%s1427_s1 + $0x50] sm:$0xff] (!%p214_p2)  ;;  %v1048_v39 = vld [vmem:[%s1427_s1 + $0x78] sm:$0xff] (!%p214_p2)  ;;  %v1053_v40 = vld [vmem:[%s1427_s1 + $0x80] sm:$0xff] (!%p214_p2) }
   0xd   : > { %v1040_v41 = vld [vmem:[%s1427_s1 + $0x58] sm:$0xff] (!%p214_p2)  ;;  %v1054_v42 = vld [vmem:[%s1427_s1 + $0x88] sm:$0xff] (!%p214_p2)  ;;  %v1055_v43 = vld [vmem:[%s1427_s1 + $0x90] sm:$0xff] (!%p214_p2) }
   0xe   : > { %s1434_s24 = smov (!%p243_p3, %s1016_s24), 1  ;;  %v1056_v44 = vld [vmem:[%s1427_s1 + $0x98] sm:$0xff]  ;;  %v888_v8 = vld [vmem:[%s1429_s3 + $0x8] sm:$0xff] }
   0xf   : > { %s1063_s26 = sshll.u32 %s1434_s24, 4 }
  0x10   : > { %s247_s29 = scalar_lea.vmem %s1426_s0, %s1063_s26 }
  0x11   : > { %v257_v1 = vld [vmem:[%s247_s29] sm:$0xff]  ;;  %v258_v2 = vld [vmem:[%s247_s29 + $0x8] sm:$0xff] }
  0x12   : > { %v1202_v3 = vpack.i.bf16 %v258_v2, %v257_v1  ;;  %v1149_v5 = vpack.c.bf16 %v258_v2, %v257_v1 }
  0x14   : > { %1203 = vrot.lane.b32.xlu0 %v1202_v3, %s1234_s8  ;;  %1213 = vrot.lane.b32.xlu1 %v1202_v3, %s1235_s9  ;;  %s943_s8 = sld [smem:[#allocation2]] }
  0x18   : > { %1208 = vrot.lane.b32.xlu0 %v1202_v3, %s1236_s10  ;;  %1218 = vrot.lane.b32.xlu1 %v1202_v3, %s1237_s11  ;;  %s1064_s10 = sshll.u32 %s1434_s24, 5 }
  0x19   : > { %s252_s13 = scalar_lea.vmem %s1432_s6, %s1064_s10 }
  0x1c   : > { %814 = vperm.xlu1 %1223, %v804_v6   ;;  %809 = vperm.xlu0 %1222, %v803_v7  }
  0x20   : > { %819 = vperm.xlu1 %1223, %v805_v9   ;;  %824 = vperm.xlu0 %1222, %v806_v10   ;;  %v889_v9 = vld [vmem:[%s1429_s3 + $0x10] sm:$0xff]  ;;  %v915_v10 = vld [vmem:[%s1430_s4] sm:$0xff] }
  0x86   : > { %v1204_v11 = vpop.permute.xlu0 %1203  ;;  %v1214_v12 = vpop.permute.xlu1 %1213 }
  0x87   : > { %v1206_v13 = vunpack.i.h.bf16 %v1204_v11  ;;  %v1205_v14 = vunpack.i.l.bf16 %v1204_v11  ;;  %v1216_v17 = vunpack.i.h.bf16 %v1214_v12  ;;  %v1215_v18 = vunpack.i.l.bf16 %v1214_v12  ;;  %v917_v11 = vld [vmem:[%s1430_s4 + $0x10] sm:$0xff] }
  0x89   : > { %v1145_v15 = vpack.c.bf16 %v1206_v13, %v1205_v14  ;;  %v1157_v26 = vpack.c.bf16 %v1216_v17, %v1215_v18 }
  0x8a   : > { %v1209_v16 = vpop.permute.xlu0 %1208  ;;  %v1219_v19 = vpop.permute.xlu1 %1218 }
  0x8b   : > { %v1211_v20 = vunpack.i.h.bf16 %v1209_v16  ;;  %v1210_v21 = vunpack.i.l.bf16 %v1209_v16  ;;  %1146 = vmatprep.subr.bf16.mxu1 %v1145_v15  ;;  %v1221_v24 = vunpack.i.h.bf16 %v1219_v19  ;;  %v1220_v25 = vunpack.i.l.bf16 %v1219_v19 }
  0x8c   : > { %1148 = vmatpush3.bf16.msra.mxu1 %v1145_v15 }
  0x8d   : > { %v1153_v23 = vpack.c.bf16 %v1211_v20, %v1210_v21  ;;  %1150 = vmatprep.subr.bf16.mxu1 %v1149_v5  ;;  %v1161_v30 = vpack.c.bf16 %v1221_v24, %v1220_v25 }
  0x8f   : > { %1100 = vmatmul.mubr.msk.f32.vlgmr.msra.gmra.mrb[0].mxu1 %vm272_vm0, %v1026_v22  ;;  %1154 = vmatprep.subr.bf16.mxu0 %v1153_v23 }
  0x90   : > { %1152 = vmatpush3.bf16.msra.mxu1 %v1149_v5  ;;  %1156 = vmatpush3.bf16.msra.mxu0 %v1153_v23 }
  0x91   : > { %1165 = vmatprep.subr.bf16.mxu1 %v1153_v23  ;;  %1102 = vmatprep.mubr.msk.f32.mxu1 %vm272_vm0, %v1027_v27 }
  0x92   : > { %1158 = vmatprep.subr.bf16.mxu0 %v1157_v26 }
  0x93   : > { %1103 = vmatmul.mubr.msk.f32.gmra.mrb[2].mxu1 %vm272_vm0, %v1028_v28  ;;  %1120 = vmatmul.mubr.msk.f32.vlgmr.msra.gmra.mrb[0].mxu0 %vm272_vm0, %v1038_v29 }
  0x94   : > { %1160 = vmatpush3.bf16.msra.mxu0 %v1157_v26  ;;  %1109 = vmatprep.mubr.msk.f32.mxu1 %vm272_vm0, %v253_v31 }
  0x95   : > { %1129 = vmatprep.mubr.msk.f32.mxu0 %vm272_vm0, %v1045_v32  ;;  %1162 = vmatprep.subr.bf16.mxu0 %v1161_v30 }
  0x97   : > { %1110 = vmatmul.mubr.msk.f32.vlgmr.msra.gmra.mrb[0].mxu1 %vm272_vm0, %v254_v33 }
  0x98   : > { %1166 = vmatpush3.bf16.msra.mxu1 %v1153_v23  ;;  %1112 = vmatprep.mubr.msk.f32.mxu1 %vm272_vm0, %v255_v34 }
  0x9b   : > { %1113 = vmatmul.mubr.msk.f32.gmra.mrb[2].mxu1 %vm272_vm0, %v256_v35  ;;  %1130 = vmatmul.mubr.msk.f32.vlgmr.msra.gmra.mrb[0].mxu0 %vm272_vm0, %v1046_v36  ;;  %v815_v47 = vpop.permute.xlu1 %814  ;;  %v810_v48 = vpop.permute.xlu0 %809  ;;  %v887_v35 = vld [vmem:[%s1429_s3] sm:$0xff]  ;;  %v890_v36 = vld [vmem:[%s1429_s3 + $0x18] sm:$0xff] }
  0x9c   : > { %1164 = vmatpush3.bf16.msra.mxu0 %v1161_v30  ;;  %1132 = vmatprep.mubr.msk.f32.mxu0 %vm272_vm0, %v1047_v37  ;;  %v916_v37 = vld [vmem:[%s1430_s4 + $0x8] sm:$0xff] }
  0x9d   : > { %1122 = vmatprep.mubr.msk.f32.mxu1 %vm272_vm0, %v1039_v38  ;;  %v918_v38 = vld [vmem:[%s1430_s4 + $0x18] sm:$0xff] }
  0x9f   : > { %1133 = vmatmul.mubr.msk.f32.gmra.mrb[2].mxu0 %vm272_vm0, %v1048_v39  ;;  %v825_v60 = vpop.permute.xlu0 %824  ;;  %v820_v0 = vpop.permute.xlu1 %819 }
  0xa0   : > { %1139 = vmatprep.mubr.msk.f32.mxu0 %vm272_vm0, %v1053_v40 }
  0xa3   : > { %1123 = vmatmul.mubr.msk.f32.vlgmr.msra.gmra.mrb[2].mxu1 %vm272_vm0, %v1040_v41  ;;  %1140 = vmatmul.mubr.msk.f32.vlgmr.msra.gmra.mrb[0].mxu0 %vm272_vm0, %v1054_v42 }
  0xa4   : > { %1142 = vmatprep.mubr.msk.f32.mxu0 %vm272_vm0, %v1055_v43 }
  0xa7   : > { %1143 = vmatmul.mubr.msk.f32.gmra.mrb[2].mxu0 %vm272_vm0, %v1056_v44 }
 0x16a   : > { %v1111_v45 = vpop.f32.mrb[0].mxu1 }
 0x16b   : > { %v448_v46 = vpop.f32.mrb[1].mxu1 }
 0x176   : > { %v1124_v49 = vpop.f32.mrb[2].mxu1  ;;  %v1141_v50 = vpop.f32.mrb[0].mxu0 }
 0x177   : > { %v1167_v51 = vadd.f32 %v1141_v50, %v1111_v45  ;;  %v566_v52 = vpop.f32.mrb[3].mxu1  ;;  %v780_v53 = vpop.f32.mrb[1].mxu0 }
 0x178   : > { %v1168_v54 = vadd.f32 %v780_v53, %v448_v46 }
 0x179   : > { %v828_v55 = vadd.f32 %v1167_v51, %v815_v47 }
 0x17a   : > { %v827_v56 = vadd.f32 %v1168_v54, %v810_v48  ;;  %v1144_v57 = vpop.f32.mrb[2].mxu0 }
 0x17b   : > { %v1169_v58 = vadd.f32 %v1144_v57, %v1124_v49  ;;  %v790_v59 = vpop.f32.mrb[3].mxu0  ;;  %v832_v62 = vsel %vm272_vm0, %v828_v55, 0.0 }
 0x17c   : > { %v831_v61 = vsel %vm272_vm0, %v827_v56, 0.0  ;;  %v1170_v63 = vadd.f32 %v790_v59, %v566_v52 }
 0x17d   : > { %v830_v2 = vadd.f32 %v1169_v58, %v825_v60  ;;  %v833_v3 = vadd.f32 %v832_v62, %v831_v61 }
 0x17e   : > { %v829_v1 = vadd.f32 %v1170_v63, %v820_v0 }
 0x17f   : > { %v836_v6 = vsel %vm272_vm0, %v830_v2, 0.0 }
 0x180   : > { %v834_v4 = vsel %vm272_vm0, %v829_v1, 0.0 }
 0x181   : > { %v835_v5 = vadd.f32 %v834_v4, %v833_v3 }
 0x183   : > { %v837_v7 = vadd.f32 %v836_v6, %v835_v5 }
 0x185   : > { %838 = vadd.xlane.f32.xlu1 %v837_v7 }
 0x196   : > { %898 = vperm.xlu1 %1223, %v888_v8  }
 0x19a   : > { %903 = vperm.xlu1 %1223, %v889_v9  }
 0x19e   : > { %921 = vperm.xlu1 %1223, %v915_v10  }
 0x1a2   : > { %931 = vperm.xlu1 %1223, %v917_v11  }
 0x212   : > { %v839_v12 = vpop.xlane.xlu1 %838 }
 0x213   : > { %v840_v13 = vrot.slane %v839_v12, 4 }
 0x215   : > { %v841_v14 = vadd.f32 %v840_v13, %v839_v12 }
 0x216   : > { %v899_v48 = vpop.permute.xlu1 %898 }
 0x217   : > { %v842_v15 = vrot.slane %v841_v14, 2 }
 0x219   : > { %v843_v16 = vadd.f32 %v842_v15, %v841_v14 }
 0x21a   : > { %v904_v50 = vpop.permute.xlu1 %903 }
 0x21b   : > { %v844_v17 = vrot.slane %v843_v16, 1 }
 0x21d   : > { %v845_v18 = vadd.f32 %v844_v17, %v843_v16 }
 0x21e   : > { %v922_v52 = vpop.permute.xlu1 %921 }
 0x21f   : > { %1183 = vpush %v845_v18 }
 0x222   : > { %v932_v63 = vpop.permute.xlu1 %931 }
 0x250   : > { %s1184_s18 = spop %1183 }
 0x251   : > { %s849_s19 = smul.f32 0.001953125, %s1184_s18 }
 0x253   : > { %v850_v19 = vstv %s849_s19 }
 0x254   : > { %v851_v20 = vsub.f32 %v827_v56, %v850_v19  ;;  %v852_v21 = vsub.f32 %v828_v55, %v850_v19  ;;  %v853_v22 = vsub.f32 %v829_v1, %v850_v19  ;;  %v854_v23 = vsub.f32 %v830_v2, %v850_v19 }
 0x255   : > { %v948_v1 = vstv %s943_s8 }
 0x256   : > { %v855_v24 = vmul.f32 %v851_v20, %v851_v20  ;;  %v856_v25 = vmul.f32 %v852_v21, %v852_v21  ;;  %v857_v26 = vmul.f32 %v853_v22, %v853_v22  ;;  %v858_v27 = vmul.f32 %v854_v23, %v854_v23 }
 0x258   : > { %v859_v28 = vsel %vm272_vm0, %v855_v24, 0.0  ;;  %v860_v29 = vsel %vm272_vm0, %v856_v25, 0.0  ;;  %v862_v31 = vsel %vm272_vm0, %v857_v26, 0.0  ;;  %v864_v33 = vsel %vm272_vm0, %v858_v27, 0.0 }
 0x259   : > { %v861_v30 = vadd.f32 %v860_v29, %v859_v28 }
 0x25b   : > { %v863_v32 = vadd.f32 %v862_v31, %v861_v30 }
 0x25d   : > { %v865_v34 = vadd.f32 %v864_v33, %v863_v32 }
 0x25f   : > { %866 = vadd.xlane.f32.xlu0 %v865_v34 }
 0x275   : > { %893 = vperm.xlu0 %1222, %v887_v35  }
 0x279   : > { %908 = vperm.xlu0 %1222, %v890_v36  }
 0x27d   : > { %926 = vperm.xlu0 %1222, %v916_v37  }
 0x281   : > { %936 = vperm.xlu0 %1222, %v918_v38  }
 0x2ec   : > { %v867_v39 = vpop.xlane.xlu0 %866 }
 0x2ed   : > { %v868_v40 = vrot.slane %v867_v39, 4 }
 0x2ef   : > { %v869_v41 = vadd.f32 %v868_v40, %v867_v39 }
 0x2f1   : > { %v870_v42 = vrot.slane %v869_v41, 2 }
 0x2f3   : > { %v871_v43 = vadd.f32 %v870_v42, %v869_v41 }
 0x2f4   : > { %v894_v49 = vpop.permute.xlu0 %893 }
 0x2f5   : > { %v872_v44 = vrot.slane %v871_v43, 1 }
 0x2f7   : > { %v873_v45 = vadd.f32 %v872_v44, %v871_v43 }
 0x2f8   : > { %v909_v51 = vpop.permute.xlu0 %908 }
 0x2f9   : > { %1185 = vpush %v873_v45 }
 0x2fc   : > { %v927_v53 = vpop.permute.xlu0 %926 }
 0x300   : > { %v937_v0 = vpop.permute.xlu0 %936 }
 0x32a   : > { %s1186_s29 = spop %1185 }
 0x32b   : > { %s877_s30 = smul.f32 0.001953125, %s1186_s29 }
 0x32d   : > { %s878_s7 = sadd.f32 1e-08, %s877_s30 }
 0x32f   : > { %v879_v46 = vstv %s878_s7 }
 0x330   : > { %1224 = vrsqrt.f32 %v879_v46 }
 0x33a   : > { %v1225_v47 = vpop.eup %1224 }
 0x33b   : > { %1187 = vpush %v1225_v47 }
 0x36c   : > { %s1188_s9 = spop %1187 }
 0x36d   : > { %v882_v54 = vstv %s1188_s9 }
 0x36e   : > { %v883_v55 = vmul.f32 %v882_v54, %v851_v20  ;;  %v884_v56 = vmul.f32 %v882_v54, %v852_v21  ;;  %v885_v57 = vmul.f32 %v882_v54, %v853_v22  ;;  %v886_v58 = vmul.f32 %v882_v54, %v854_v23 }
 0x370   : > { %v911_v59 = vmul.f32 %v894_v49, %v883_v55  ;;  %v912_v60 = vmul.f32 %v899_v48, %v884_v56  ;;  %v913_v61 = vmul.f32 %v904_v50, %v885_v57  ;;  %v914_v62 = vmul.f32 %v909_v51, %v886_v58 }
 0x372   : > { %v939_v2 = vadd.f32 %v922_v52, %v911_v59  ;;  %v940_v3 = vadd.f32 %v927_v53, %v912_v60  ;;  %v941_v4 = vadd.f32 %v932_v63, %v913_v61  ;;  %v942_v5 = vadd.f32 %v937_v0, %v914_v62 }
 0x374   : > { %vm944_vm1 = vcmp.ge.f32.partialorder %v939_v2, 0.0  ;;  %vm945_vm2 = vcmp.ge.f32.partialorder %v940_v3, 0.0  ;;  %vm946_vm3 = vcmp.ge.f32.partialorder %v941_v4, 0.0  ;;  %vm947_vm4 = vcmp.ge.f32.partialorder %v942_v5, 0.0 }
 0x375   : > { %v949_v6 = vmul.f32 %v948_v1, %v939_v2  ;;  %v950_v7 = vmul.f32 %v948_v1, %v940_v3  ;;  %v951_v8 = vmul.f32 %v948_v1, %v941_v4  ;;  %v952_v9 = vmul.f32 %v948_v1, %v942_v5 }
 0x377   : > { %v953_v10 = vsel %vm944_vm1, %v939_v2, %v949_v6  ;;  %v954_v11 = vsel %vm945_vm2, %v940_v3, %v950_v7  ;;  %v955_v12 = vsel %vm946_vm3, %v941_v4, %v951_v8  ;;  %v956_v13 = vsel %vm947_vm4, %v942_v5, %v952_v9 }
 0x378   : > { %957 = vst.msk [vmem:[%s252_s13] sm:$0xff] %vm272_vm0, %v953_v10  ;;  %958 = vst.msk [vmem:[%s252_s13 + $0x8] sm:$0xff] %vm272_vm0, %v954_v11 }
 0x379   : > { %959 = vst.msk [vmem:[%s252_s13 + $0x10] sm:$0xff] %vm272_vm0, %v955_v12  ;;  %960 = vst.msk [vmem:[%s252_s13 + $0x18] sm:$0xff] %vm272_vm0, %v956_v13 }
 0x37a PF: > { %s17_s23 = sadd.s32 1, %s1232_s23  }
 0x37b   : > { %p14_p4 = scmp.ge.s32.totalorder %s17_s23, 4  }
 0x37d   :  { %16 = sbr.rel (!%p14_p4) target bundleno = 2 (0x2), region = 78 }

</bundles_post_ra>
